<compile_context>
chip_gen: v7x
topology: tpu7x:2x2x1
jax: 0.10.0
libtpu: 0.0.40
codegen_flags: <defaults>
</compile_context>

<pallas_src>
import jax
import jax.numpy as jnp
from jax.experimental import pallas as pl
from jax.experimental.pallas import tpu as pltpu


def _round_up(x, m):
    return ((x + m - 1) // m) * m


def _tpu_generation():
    """(vmem_capacity_bytes, preferred_batch_tile, is_v7x) for the local TPU generation."""
    try:
        kind = jax.devices()[0].device_kind.lower()
    except Exception:
        kind = ""
    is_v7 = "v7" in kind
    is_v5_or_older = any(v in kind for v in ("v5", "v4", "v3", "v2"))
    if is_v7:
        vmem_cap = 64 << 20
    elif is_v5_or_older or ("v6" in kind):
        vmem_cap = 128 << 20
    else:
        vmem_cap = 64 << 20  # unknown chip: be conservative
    try:  # refine with the real capacity if the query is available at trace time
        info = pltpu.get_tpu_info()
        vmem_cap = int(getattr(info, "vmem_capacity_bytes", vmem_cap))
    except Exception:
        pass
    tb_pref = 128 if is_v5_or_older else 256  # v6e/v7x MXU is 256-wide, v5e is 128-wide
    return vmem_cap, tb_pref, is_v7


def _pipeline_kernel(x_ref, meta_ref, w1_ref, b1_ref, wf_ref, bf_ref,
                     out_ref, acc_ref):
    k = pl.program_id(1)

    # Main encoder matmul on the MXU.  x may arrive as f32 (no host copy) or bf16 (padded
    # copy); the in-kernel cast handles both and keeps the accumulation in f32.
    prod = jnp.dot(x_ref[...].astype(jnp.bfloat16), w1_ref[...],
                   preferred_element_type=jnp.float32)

    @pl.when(k == 0)
    def _first():
        acc_ref[...] = prod          # direct write: no zero-init write + re-read

    @pl.when(k != 0)
    def _accum():
        acc_ref[...] += prod

    @pl.when(k == pl.num_programs(1) - 1)
    def _finalize():
        # Bias + ReLU once, after the full K reduction.
        h = jnp.maximum(acc_ref[...] + b1_ref[...], 0.0)                 # (TB, H_pad) f32
        # Metadata lives (pre-packed on host) in columns that are exactly zero after ReLU,
        # so one tail matmul covers both the latent features and the metadata features.
        h = (h + meta_ref[...].astype(jnp.float32)).astype(jnp.bfloat16)
        logits = (jnp.dot(h, wf_ref[...], preferred_element_type=jnp.float32)
                  + bf_ref[...])                                         # (TB, C_pad) f32
        # Stable sigmoid via tanh (EUP); avoids exp overflow for very negative logits.
        out_ref[...] = (0.5 * (jnp.tanh(0.5 * logits) + 1.0)).astype(out_ref.dtype)


def full_pipeline_forward(x_nchw, metadata, params, *, tk_pref=512):
    B = x_nchw.shape[0]
    x_flat = x_nchw.reshape(B, -1).astype(jnp.float32)   # torch .reshape semantics (row-major)
    D = x_flat.shape[1]
    hidden = params["w1"].shape[1]
    latent = params["wmu"].shape[1]
    meta_dim = metadata.shape[1]
    n_classes = params["blog"].shape[1]

    vmem_cap, tb_pref, is_v7 = _tpu_generation()

    # ---------- host-side algebraic fold (scaler + logreg into the encoder tail) ----------
    inv_std = 1.0 / params["scaler_std"]                  # (1, latent+meta)
    inv_std_mu, inv_std_meta = inv_std[:, :latent], inv_std[:, latent:]
    mean_mu, mean_meta = params["scaler_mean"][:, :latent], params["scaler_mean"][:, latent:]
    wlog_mu, wlog_meta = params["wlog_T"][:latent, :], params["wlog_T"][latent:, :]

    w_fused = (params["wmu"] * inv_std_mu) @ wlog_mu      # (hidden, n_classes)
    w_meta_fused = inv_std_meta.T * wlog_meta             # (meta_dim, n_classes)
    b_fused = (params["blog"]
               + ((params["bmu"] - mean_mu) * inv_std_mu) @ wlog_mu
               - (mean_meta * inv_std_meta) @ wlog_meta)  # (1, n_classes)

    # ---------- tiling ----------
    H_pad = _round_up(hidden + meta_dim, 128)   # room for metadata in h's ReLU-zero columns
    C_pad = _round_up(n_classes, 128)           # lane-dense output
    D128 = _round_up(D, 128)

    # Batch tile (generation aware).
    TB = min(tb_pref, _round_up(B, 8))
    if is_v7 and (_round_up(B, TB) // TB) < 2 and TB % 16 == 0 and TB >= 16:
        TB //= 2                                # give the 2nd TensorCore a batch tile
    B_pad = _round_up(B, TB)

    # K tile: largest multiple of 128 <= tk_pref that divides D128 (no tile-induced K padding).
    TK = 128
    t = (min(tk_pref, D128) // 128) * 128
    while t >= 128:
        if D128 % t == 0:
            TK = t
            break
        t -= 128

    need_pad_x = (B_pad != B) or (D128 != D)
    x_bytes = 2 if need_pad_x else 4            # padded copy is written in bf16

    def _vmem_usage(tk):
        return (2 * TB * tk * x_bytes           # x tile, double-buffered
                + 2 * tk * H_pad * 2            # w1 tile (bf16), double-buffered
                + 2 * TB * H_pad * 2            # packed metadata tile (bf16)
                + 2 * H_pad * 4                 # b1 (f32)
                + 2 * H_pad * C_pad * 2         # fused tail weight (bf16)
                + 2 * C_pad * 4                 # fused bias (f32)
                + 2 * TB * C_pad * 2            # output tile (bf16)
                + TB * H_pad * 4)               # f32 accumulator scratch

    budget = int(0.6 * vmem_cap)                # headroom for compiler-internal scratch
    while _vmem_usage(TK) > budget and TK > 128:
        t = TK - 128
        while t >= 128 and D128 % t != 0:
            t -= 128
        if t < 128:
            break
        TK = t

    # ---------- operand packing (weights are tiny; x is only copied if padding is required) ----------
    if need_pad_x:
        x_in = jnp.zeros((B_pad, D128), jnp.bfloat16).at[:B, :D].set(x_flat.astype(jnp.bfloat16))
    else:
        x_in = x_flat                            # f32 straight from HBM; cast in-kernel

    meta_p = (jnp.zeros((B_pad, H_pad), jnp.bfloat16)
              .at[:B, hidden:hidden + meta_dim].set(metadata.astype(jnp.bfloat16)))
    w1_p = jnp.zeros((D128, H_pad), jnp.bfloat16).at[:D, :hidden].set(params["w1"].astype(jnp.bfloat16))
    b1_p = jnp.zeros((1, H_pad), jnp.float32).at[:, :hidden].set(params["b1"])
    wf_p = (jnp.zeros((H_pad, C_pad), jnp.bfloat16)
            .at[:hidden, :n_classes].set(w_fused.astype(jnp.bfloat16))
            .at[hidden:hidden + meta_dim, :n_classes].set(w_meta_fused.astype(jnp.bfloat16)))
    bf_p = jnp.zeros((1, C_pad), jnp.float32).at[:, :n_classes].set(b_fused)

    grid = (B_pad // TB, D128 // TK)
    usage = _vmem_usage(TK)
    vmem_limit = int(min(vmem_cap - (2 << 20), max(2 * usage + (8 << 20), 32 << 20)))

    # NOTE: the k-invariant operands (meta/b1/wf/bf) could be single-buffered via
    # pipeline_mode=pl.Buffered(1) on VMEM-tight configs; default buffering kept here since
    # they are small after the bf16 cast and this keeps compatibility across jax versions.
    out = pl.pallas_call(
        _pipeline_kernel,
        out_shape=jax.ShapeDtypeStruct((B_pad, C_pad), jnp.bfloat16),
        grid_spec=pltpu.PrefetchScalarGridSpec(
            num_scalar_prefetch=0,
            grid=grid,
            in_specs=[
                pl.BlockSpec((TB, TK), lambda i, k: (i, k)),          # x (streamed over batch, K)
                pl.BlockSpec((TB, H_pad), lambda i, k: (i, 0)),       # packed metadata (per batch tile)
                pl.BlockSpec((TK, H_pad), lambda i, k: (k, 0)),       # w1 (streamed over K)
                pl.BlockSpec((1, H_pad), lambda i, k: (0, 0)),        # b1
                pl.BlockSpec((H_pad, C_pad), lambda i, k: (0, 0)),    # fused tail weight (+meta rows)
                pl.BlockSpec((1, C_pad), lambda i, k: (0, 0)),        # fused bias
            ],
            out_specs=pl.BlockSpec((TB, C_pad), lambda i, k: (i, 0)),
            scratch_shapes=[pltpu.VMEM((TB, H_pad), jnp.float32)],
        ),
        compiler_params=pltpu.CompilerParams(
            dimension_semantics=("parallel", "arbitrary"),
            vmem_limit_bytes=vmem_limit,
        ),
    )(x_in, meta_p, w1_p, b1_p, wf_p, bf_p)

    return out[:B, :n_classes].astype(jnp.float32)


def make_params(key, in_dim, hidden, latent, meta_dim, n_classes):
    ks = jax.random.split(key, 8)
    n_feat = latent + meta_dim
    return {
        # Synthetic MLP VAE encoder: flatten -> hidden (ReLU) -> mu  (logvar head unused here)
        "w1": jax.random.normal(ks[0], (in_dim, hidden), jnp.float32) * 0.05,
        "b1": jax.random.normal(ks[1], (1, hidden), jnp.float32) * 0.01,
        "wmu": jax.random.normal(ks[2], (hidden, latent), jnp.float32) * 0.1,
        "bmu": jax.random.normal(ks[3], (1, latent), jnp.float32) * 0.01,
        # StandardScaler stats over combined features (latent + metadata)
        "scaler_mean": jax.random.normal(ks[4], (1, n_feat), jnp.float32) * 0.2,
        "scaler_std": jnp.abs(jax.random.normal(ks[5], (1, n_feat), jnp.float32)) + 0.5,
        # Logistic regression: sklearn coef_ is (n_classes, n_feat); store transpose.
        "wlog_T": jax.random.normal(ks[6], (n_feat, n_classes), jnp.float32) * 0.3,
        "blog": jax.random.normal(ks[7], (1, n_classes), jnp.float32) * 0.1,
    }


def reference_forward(x_nchw, metadata, params):
    # Plain-JAX f32 reference matching the PyTorch semantics exactly (no folding).
    B = x_nchw.shape[0]
    x = x_nchw.reshape(B, -1).astype(jnp.float32)
    h = jnp.maximum(x @ params["w1"] + params["b1"], 0.0)
    mu = h @ params["wmu"] + params["bmu"]
    combined = jnp.concatenate([mu, metadata.astype(jnp.float32)], axis=1)
    scaled = (combined - params["scaler_mean"]) / params["scaler_std"]
    logits = scaled @ params["wlog_T"] + params["blog"]
    return jax.nn.sigmoid(logits)


if __name__ == "__main__":
    B, C, H, W = 2, 4, 16, 16
    HIDDEN, LATENT, META, N_CLASSES = 64, 16, 8, 3

    key = jax.random.PRNGKey(0)
    k_x, k_m, k_p = jax.random.split(key, 3)

    x = jax.random.normal(k_x, (B, C, H, W), jnp.float32)
    metadata = jax.random.normal(k_m, (B, META), jnp.float32)
    params = make_params(k_p, C * H * W, HIDDEN, LATENT, META, N_CLASSES)

    out = full_pipeline_forward(x, metadata, params)
    out = jax.block_until_ready(out)

    ref = reference_forward(x, metadata, params)
    assert out.shape == (B, N_CLASSES)
    # bf16 matmuls (f32 accumulation) + bf16 tail weights + bf16 output storage:
    # post-sigmoid abs error budget ~1e-2; 2e-2 gives margin across TPU generations.
    assert jnp.allclose(out, ref, atol=2e-2, rtol=0.0), "mismatch vs reference"

    print("KERNEL_OK")
</pallas_src>

<mosaic_0001>
module attributes {stable_mosaic.version = 11 : i64} {
  func.func @_pipeline_kernel(%arg0: i32, %arg1: i32, %arg2: memref<8x512xbf16, #tpu.memory_space<vmem>>, %arg3: memref<8x128xbf16, #tpu.memory_space<vmem>>, %arg4: memref<512x128xbf16, #tpu.memory_space<vmem>>, %arg5: memref<1x128xf32, #tpu.memory_space<vmem>>, %arg6: memref<128x128xbf16, #tpu.memory_space<vmem>>, %arg7: memref<1x128xf32, #tpu.memory_space<vmem>>, %arg8: memref<8x128xbf16, #tpu.memory_space<vmem>>, %arg9: memref<8x128xf32, #tpu.memory_space<vmem>>) attributes {dimension_semantics = [#tpu.dimension_semantics<parallel>, #tpu.dimension_semantics<arbitrary>], iteration_bounds = array<i64: 1, 2>, scalar_prefetch = 0 : i64, scratch_operands = 1 : i64, tpu.core_type = #tpu.core_type<tc>, window_params = [{transform_indices = @transform_0, window_bounds = array<i64: 8, 512>}, {transform_indices = @transform_1, window_bounds = array<i64: 8, 128>}, {transform_indices = @transform_2, window_bounds = array<i64: 512, 128>}, {pipeline_mode = #tpu.pipeline_mode<synchronous>, transform_indices = @transform_3, window_bounds = array<i64: 1, 128>}, {pipeline_mode = #tpu.pipeline_mode<synchronous>, transform_indices = @transform_4, window_bounds = array<i64: 128, 128>}, {pipeline_mode = #tpu.pipeline_mode<synchronous>, transform_indices = @transform_5, window_bounds = array<i64: 1, 128>}, {transform_indices = @transform_6, window_bounds = array<i64: 8, 128>}]} {
    %c0 = arith.constant 0 : index
    %c0_0 = arith.constant 0 : index
    %0 = vector.load %arg2[%c0, %c0_0] : memref<8x512xbf16, #tpu.memory_space<vmem>>, vector<8x512xbf16>
    %c0_1 = arith.constant 0 : index
    %c0_2 = arith.constant 0 : index
    %1 = vector.load %arg4[%c0_1, %c0_2] : memref<512x128xbf16, #tpu.memory_space<vmem>>, vector<512x128xbf16>
    %cst = arith.constant dense<0.000000e+00> : vector<8x128xf32>
    %2 = tpu.matmul %0, %1, %cst {dimension_numbers = #tpu.dot_dimension_numbers<[1], [0], [0], [1], [0, 0, 1, 1], [], []>} : vector<8x512xbf16>, vector<512x128xbf16>, vector<8x128xf32> -> vector<8x128xf32>
    %c0_i32 = arith.constant 0 : i32
    %3 = arith.cmpi eq, %arg1, %c0_i32 : i32
    %4 = arith.extui %3 : i1 to i32
    %c0_i32_3 = arith.constant 0 : i32
    %5 = arith.cmpi ne, %4, %c0_i32_3 : i32
    scf.if %5 {
      %c0_7 = arith.constant 0 : index
      %c0_8 = arith.constant 0 : index
      %12 = vector.load %arg9[%c0_7, %c0_8] : memref<8x128xf32, #tpu.memory_space<vmem>>, vector<8x128xf32>
      tpu.vector_store %arg9[%c0_7, %c0_8], %2 {strides = array<i32>} : memref<8x128xf32, #tpu.memory_space<vmem>>, vector<8x128xf32>,
    } else {
    }
    %c0_i32_4 = arith.constant 0 : i32
    %6 = arith.cmpi ne, %arg1, %c0_i32_4 : i32
    %7 = arith.extui %6 : i1 to i32
    %c0_i32_5 = arith.constant 0 : i32
    %8 = arith.cmpi ne, %7, %c0_i32_5 : i32
    scf.if %8 {
      %c0_7 = arith.constant 0 : index
      %c0_8 = arith.constant 0 : index
      %12 = vector.load %arg9[%c0_7, %c0_8] : memref<8x128xf32, #tpu.memory_space<vmem>>, vector<8x128xf32>
      %13 = arith.addf %12, %2 : vector<8x128xf32>
      %c0_9 = arith.constant 0 : index
      %c0_10 = arith.constant 0 : index
      %14 = vector.load %arg9[%c0_9, %c0_10] : memref<8x128xf32, #tpu.memory_space<vmem>>, vector<8x128xf32>
      tpu.vector_store %arg9[%c0_9, %c0_10], %13 {strides = array<i32>} : memref<8x128xf32, #tpu.memory_space<vmem>>, vector<8x128xf32>,
    } else {
    }
    %c1_i32 = arith.constant 1 : i32
    %9 = arith.cmpi eq, %arg1, %c1_i32 : i32
    %10 = arith.extui %9 : i1 to i32
    %c0_i32_6 = arith.constant 0 : i32
    %11 = arith.cmpi ne, %10, %c0_i32_6 : i32
    scf.if %11 {
      %c0_7 = arith.constant 0 : index
      %c0_8 = arith.constant 0 : index
      %12 = vector.load %arg9[%c0_7, %c0_8] : memref<8x128xf32, #tpu.memory_space<vmem>>, vector<8x128xf32>
      %c0_9 = arith.constant 0 : index
      %c0_10 = arith.constant 0 : index
      %13 = vector.load %arg5[%c0_9, %c0_10] : memref<1x128xf32, #tpu.memory_space<vmem>>, vector<1x128xf32>
      %14 = vector.broadcast %13 : vector<1x128xf32> to vector<8x128xf32>
      %15 = arith.addf %12, %14 : vector<8x128xf32>
      %cst_11 = arith.constant 0.000000e+00 : f32
      %16 = vector.broadcast %cst_11 : f32 to vector<8x128xf32>
      %17 = arith.maximumf %15, %16 : vector<8x128xf32>
      %c0_12 = arith.constant 0 : index
      %c0_13 = arith.constant 0 : index
      %18 = vector.load %arg3[%c0_12, %c0_13] : memref<8x128xbf16, #tpu.memory_space<vmem>>, vector<8x128xbf16>
      %19 = arith.extf %18 : vector<8x128xbf16> to vector<8x128xf32>
      %20 = arith.addf %17, %19 : vector<8x128xf32>
      %21 = arith.truncf %20 : vector<8x128xf32> to vector<8x128xbf16>
      %c0_14 = arith.constant 0 : index
      %c0_15 = arith.constant 0 : index
      %22 = vector.load %arg6[%c0_14, %c0_15] : memref<128x128xbf16, #tpu.memory_space<vmem>>, vector<128x128xbf16>
      %cst_16 = arith.constant dense<0.000000e+00> : vector<8x128xf32>
      %23 = tpu.matmul %21, %22, %cst_16 {dimension_numbers = #tpu.dot_dimension_numbers<[1], [0], [0], [1], [0, 0, 1, 1], [], []>} : vector<8x128xbf16>, vector<128x128xbf16>, vector<8x128xf32> -> vector<8x128xf32>
      %c0_17 = arith.constant 0 : index
      %c0_18 = arith.constant 0 : index
      %24 = vector.load %arg7[%c0_17, %c0_18] : memref<1x128xf32, #tpu.memory_space<vmem>>, vector<1x128xf32>
      %25 = vector.broadcast %24 : vector<1x128xf32> to vector<8x128xf32>
      %26 = arith.addf %23, %25 : vector<8x128xf32>
      %cst_19 = arith.constant 5.000000e-01 : f32
      %27 = vector.broadcast %cst_19 : f32 to vector<8x128xf32>
      %28 = arith.mulf %27, %26 : vector<8x128xf32>
      %29 = math.tanh %28 : vector<8x128xf32>
      %cst_20 = arith.constant 1.000000e+00 : f32
      %30 = vector.broadcast %cst_20 : f32 to vector<8x128xf32>
      %31 = arith.addf %29, %30 : vector<8x128xf32>
      %cst_21 = arith.constant 5.000000e-01 : f32
      %32 = vector.broadcast %cst_21 : f32 to vector<8x128xf32>
      %33 = arith.mulf %32, %31 : vector<8x128xf32>
      %34 = arith.truncf %33 : vector<8x128xf32> to vector<8x128xbf16>
      %c0_22 = arith.constant 0 : index
      %c0_23 = arith.constant 0 : index
      %35 = vector.load %arg8[%c0_22, %c0_23] : memref<8x128xbf16, #tpu.memory_space<vmem>>, vector<8x128xbf16>
      tpu.vector_store %arg8[%c0_22, %c0_23], %34 {strides = array<i32>} : memref<8x128xbf16, #tpu.memory_space<vmem>>, vector<8x128xbf16>,
    } else {
    }
    return
  }
  func.func @transform_0(%arg0: i32, %arg1: i32) -> (i32, i32) {
    %c0_i32 = arith.constant 0 : i32
    return %arg0, %arg1 : i32, i32
  }
  func.func @transform_1(%arg0: i32, %arg1: i32) -> (i32, i32) {
    %c0_i32 = arith.constant 0 : i32
    %c0_i32_0 = arith.constant 0 : i32
    return %arg0, %c0_i32 : i32, i32
  }
  func.func @transform_2(%arg0: i32, %arg1: i32) -> (i32, i32) {
    %c0_i32 = arith.constant 0 : i32
    %c0_i32_0 = arith.constant 0 : i32
    return %arg1, %c0_i32 : i32, i32
  }
  func.func @transform_3(%arg0: i32, %arg1: i32) -> (i32, i32) {
    %c0_i32 = arith.constant 0 : i32
    %c0_i32_0 = arith.constant 0 : i32
    %c0_i32_1 = arith.constant 0 : i32
    return %c0_i32, %c0_i32_0 : i32, i32
  }
  func.func @transform_4(%arg0: i32, %arg1: i32) -> (i32, i32) {
    %c0_i32 = arith.constant 0 : i32
    %c0_i32_0 = arith.constant 0 : i32
    %c0_i32_1 = arith.constant 0 : i32
    return %c0_i32, %c0_i32_0 : i32, i32
  }
  func.func @transform_5(%arg0: i32, %arg1: i32) -> (i32, i32) {
    %c0_i32 = arith.constant 0 : i32
    %c0_i32_0 = arith.constant 0 : i32
    %c0_i32_1 = arith.constant 0 : i32
    return %c0_i32, %c0_i32_0 : i32, i32
  }
  func.func @transform_6(%arg0: i32, %arg1: i32) -> (i32, i32) {
    %c0_i32 = arith.constant 0 : i32
    %c0_i32_0 = arith.constant 0 : i32
    return %arg0, %c0_i32 : i32, i32
  }
}

</mosaic_0001>

<bundles_post_ra>
// kernel: tpu_custom_call.1
= control target key start
LH: loop header
LB: loop body
LE: loop exit
PB: predicated region body
PF: predicated region fallthrough
CT: control target
= control target key end

     0   :  { %s1812_s0 = inlined_call_operand.hbm [shape: bf16[8,1024], index: 0, kind: input, shape index: {}]   ;;  %s1813_s1 = inlined_call_operand.hbm [shape: bf16[8,128], index: 1, kind: input, shape index: {}]   ;;  %s1814_s2 = inlined_call_operand.hbm [shape: bf16[1024,128], index: 2, kind: input, shape index: {}]   ;;  %s1815_s3 = inlined_call_operand.vmem [shape: f32[1,128], index: 3, kind: input, shape index: {}]   ;;  %s1816_s4 = inlined_call_operand.hbm [shape: bf16[128,128], index: 4, kind: input, shape index: {}]   ;;  %s1817_s5 = inlined_call_operand.vmem [shape: f32[1,128], index: 5, kind: input, shape index: {}]   ;;  %s1818_s6 = inlined_call_operand.hbm [shape: bf16[8,128], index: 6, kind: output, shape index: {}]  }
   0x1   :  { %1828 = sst [smem:[#allocation19_spill]] %s1812_s0 }
   0x2   :  { %1829 = sst [smem:[#allocation20_spill]] %s1813_s1 }
   0x3   :  { %11 = vsyncpa [#allocation4], 0 }
   0x4   :  { %13 = vsyncpa [#allocation4 + $0x1], 0 }
   0x5   :  { %14 = vsyncpa [#allocation7], 0 }
   0x6   :  { %15 = vsyncpa [#allocation5], 0  ;;  %s1500_s21 = smov 0   ;;  %s1502_s22 = smov 0  }
   0x7   :  { %s1504_s23 = smov 0   ;;  %s1506_s24 = smov 0  }
   0x8   :  { %s1508_s25 = smov 0   ;;  %s1510_s26 = smov 0  }
   0x9 LB: > { %1830 = sst [smem:[#allocation16_spill]] %s1442_s23  ;;  %s1529_s27 = sadd.s32 4294967295, %s1454_s26   ;;  %s1454_s26 = sphi %s1510_s26, %s21_s26   ;;  %s1450_s25 = sphi %s1508_s25, %s1858_s25   ;;  %s1446_s24 = sphi %s1506_s24, %s1857_s24   ;;  %s1442_s23 = sphi %s1504_s23, %s1853_s23   ;;  %s1438_s22 = sphi %s1502_s22, %s1856_s22   ;;  %s1434_s21 = sphi %s1500_s21, %s1855_s21  }
   0xa   : > { %p55_p0 = scmp.ne.s32.totalorder %s1438_s22, %s1434_s21  ;;  %p1819_p1 = scmp.eq.s32.totalorder %s1529_s27, 0 }
   0xb   : > { %p965_p2 = scmp.ge.s32.totalorder %s1454_s26, 1  ;;  %p207_p3 = scmp.lt.s32.totalorder %s1454_s26, 3 }
   0xc   : > { %p1537_p4 = por %p1819_p1, %p55_p0  ;;  %s1456_s30 = smov [#allocation6]  }
   0xd   : > { %p1541_p5 = pnand %p965_p2, %p207_p3  ;;  %s222_s7 = sshll.u32 %s1456_s30, 4  ;;  %s223_s7 = int_to_ptr.vmem [resolvable:$true] %s222_s7 }
   0xe   : > { %s1831_s28 = scalar_select %p1537_p4, 1, 0 }
   0xf   : > { %s1832_s29 = scalar_select %p1541_p5, 1, 0 }
  0x10   : > { %p1124_p6 = pneg %p1541_p5  ;;  %s30_s9 = sadd.s32 1, %s1450_s25 }
  0x11   : > { %s42_s10 = sadd.s32 1, %s1442_s23  ;;  %p1555_p8 = scmp.ge.s32.totalorder %s30_s9, 2 }
  0x12   : > { %p1549_p7 = pnand %p1124_p6, %p1819_p1  ;;  %s1835_s1 = sld [smem:[#allocation20_spill]] }
  0x13   : > { %s1834_s11 = scalar_select %p1555_p8, 1, 0 }
  0x14   : > { %p1822_p10 = pneg %p1549_p7 }
  0x18   : > { %s1246_s14 = scalar_lea.hbm %s1835_s1, 64 }
  0x19   : > { %p1247_p9 = scmp.ne.s32.totalorder %s1835_s1, %s1246_s14  ;;  %p1253_p13 = scmp.lt.u32.totalorder %s1246_s14, %s1835_s1 }
  0x1b   : > { %p1249_p11 = pnand %p1822_p10, %p1247_p9 }
  0x1d   : > { %p1250_p12 = pneg %p1249_p11 }
  0x1f   : > { %p1255_p0 = pnand %p1253_p13, %p1250_p12 }
  0x21   : > { %1258 = shalt.err (!%p1255_p0)
}
  0x22   : > { %s1259_s19 = scalar_lea.vmem %s223_s7, 64  ;;  %p1267_p1 = scmp.lt.s32.totalorder %s223_s7, %s223_s7 }
  0x23   : > { %p1260_p2 = scmp.ne.s32.totalorder %s223_s7, %s1259_s19  ;;  %p1268_p4 = scmp.lt.s32.totalorder %s1259_s19, %s1259_s19 }
  0x25   : > { %p1262_p3 = pnand %p1260_p2, %p1822_p10  ;;  %p1269_p5 = por %p1268_p4, %p1267_p1 }
  0x27   : > { %p1263_p6 = pneg %p1262_p3 }
  0x29   : > { %p1270_p8 = pnand %p1269_p5, %p1263_p6 }
  0x2b   : > { %1273 = shalt.err (!%p1270_p8)
}
  0x2c   : > { %1127 = dma.hbm_to_vmem [thread:$0]  (!%p1549_p7), %s1835_s1, 64, %s223_s7, [#allocation7]  }
  0x2d   : > { %p1836_p1 = scmp.ne.s32.totalorder %s1834_s11, 0  ;;  %p49_p4 = scmp.ne.s32.totalorder %s1442_s23, %s1438_s22 }
  0x2e   : > { %p50_p5 = scmp.eq.s32.totalorder %s1454_s26, 0  ;;  %p1140_p8 = scmp.lt.s32.totalorder %s1454_s26, 2 }
  0x2f   : > { %s1860_s9 = smov (%p1836_p1, %s30_s9), 0  ;;  %s252_s12 = sand.u32 1, %s1454_s26  }
  0x30   : > { %1837 = sst [smem:[#allocation17_spill]] %s1860_s9  ;;  %s38_s30 = ssub.s32 %s1450_s25, %s1860_s9 }
  0x31   : > { %p40_p9 = scmp.eq.s32.totalorder %s38_s30, 0  ;;  %p51_p11 = por %p50_p5, %p49_p4 }
  0x32   : > { %s254_s13 = sand.u32 1, %s1442_s23   ;;  %s1033_s16 = sshll.u32 %s1450_s25, 8 }
  0x33   : > { %s1596_s14 = scalar_select %p40_p9, %s1442_s23, %s42_s10  }
  0x34   : > { %s969_s15 = sshll.u32 %s254_s13, 4  ;;  %s1839_s0 = sld [smem:[#allocation19_spill]] }
  0x35   : > { %1838 = sst [smem:[#allocation18_spill]] %s1596_s14  ;;  %s256_s18 = scalar_lea.vmem [#allocation3], %s969_s15 }
  0x36   : > { %s266_s19 = sshll.u32 %s256_s18, 4  ;;  %p1606_p12 = pnand %p1140_p8, %p51_p11  ;;  %s1604_s19 = int_to_ptr.vmem [resolvable:$true] %s266_s19 }
  0x37   : > { %s1610_s10 = sshll.u32 %s254_s13, 8  ;;  %s1034_s21 = sshll.u32 %s1450_s25, 12 }
  0x38   : > { %s1840_s20 = scalar_select %p1606_p12, 1, 0 }
  0x39   : > { %s1613_s30 = scalar_lea.sflag [#allocation4], %s252_s12  ;;  %p1825_p0 = pneg %p1606_p12 }
  0x3a   : > { %s1602_s11 = scalar_lea.hbm %s1839_s0, %s1033_s16  ;;  %s1279_s7 = scalar_lea.hbm %s1839_s0, 512 }
  0x3b   : > { %s1274_s16 = scalar_lea.hbm %s1602_s11, 256  ;;  %p1280_p6 = scmp.lt.u32.totalorder %s1602_s11, %s1839_s0 }
  0x3c   : > { %p1275_p13 = scmp.ne.s32.totalorder %s1602_s11, %s1274_s16  ;;  %p1281_p1 = scmp.lt.u32.totalorder %s1279_s7, %s1274_s16 }
  0x3d   : > { %p1283_p5 = scmp.lt.u32.totalorder %s1274_s16, %s1602_s11 }
  0x3e   : > { %p1277_p2 = pnand %p1825_p0, %p1275_p13  ;;  %p1282_p4 = por %p1281_p1, %p1280_p6 }
  0x40   : > { %p1278_p3 = pneg %p1277_p2  ;;  %p1284_p8 = por %p1283_p5, %p1282_p4 }
  0x42   : > { %p1285_p9 = pnand %p1284_p8, %p1278_p3 }
  0x44   : > { %1288 = shalt.err (!%p1285_p9)
}
  0x45   : > { %s1289_s12 = scalar_lea.vmem %s1604_s19, 256  ;;  %s1457_s13 = smov [#allocation3]  }
  0x46   : > { %p1290_p11 = scmp.ne.s32.totalorder %s1604_s19, %s1289_s12  ;;  %s1294_s15 = sshll.u32 %s1457_s13, 4  ;;  %s1295_s15 = int_to_ptr.vmem [resolvable:$false] %s1294_s15 }
  0x47   : > { %s1296_s1 = scalar_lea.vmem %s1295_s15, 512  ;;  %p1297_p10 = scmp.lt.s32.totalorder %s1604_s19, %s1295_s15 }
  0x48   : > { %p1292_p13 = pnand %p1290_p11, %p1825_p0  ;;  %p1298_p6 = scmp.lt.s32.totalorder %s1296_s1, %s1289_s12 }
  0x4a   : > { %p1293_p2 = pneg %p1292_p13  ;;  %p1299_p1 = por %p1298_p6, %p1297_p10 }
  0x4c   : > { %p1300_p4 = pnand %p1299_p1, %p1293_p2 }
  0x4e   : > { %1303 = shalt.err (!%p1300_p4)
}
  0x4f   : > { %1134 = dma.hbm_to_vmem [thread:$0]  (!%p1606_p12), %s1602_s11, 256, %s1604_s19, %s1613_s30  }
  0x50   : > { %s277_s16 = scalar_lea.vmem [#allocation8], %s1610_s10  ;;  %s1458_s7 = smov [#allocation9]  }
  0x51   : > { %s284_s17 = sshll.u32 %s277_s16, 4  ;;  %s235_s18 = sshll.u32 %s1458_s7, 4  ;;  %s1642_s17 = int_to_ptr.vmem [resolvable:$true] %s284_s17  ;;  %s236_s18 = int_to_ptr.vmem [resolvable:$true] %s235_s18 }
  0x52   : > { %s1649_s15 = scalar_lea.hbm %s1814_s2, %s1034_s21  ;;  %s1304_s9 = scalar_lea.hbm %s1816_s4, 1024 }
  0x53   : > { %p1305_p10 = scmp.ne.s32.totalorder %s1816_s4, %s1304_s9  ;;  %p1841_p3 = pneg %p1549_p7 }
  0x54   : > { %p1311_p9 = scmp.lt.u32.totalorder %s1304_s9, %s1816_s4 }
  0x55   : > { %p1307_p5 = pnand %p1305_p10, %p1841_p3 }
  0x57   : > { %p1308_p8 = pneg %p1307_p5 }
  0x59   : > { %p1313_p11 = pnand %p1311_p9, %p1308_p8 }
  0x5b   : > { %1316 = shalt.err (!%p1313_p11)
}
  0x5c   : > { %s1317_s10 = scalar_lea.vmem %s236_s18, 1024  ;;  %p1842_p2 = pmov %p1841_p3 }
  0x5d   : > { %p1318_p13 = scmp.ne.s32.totalorder %s236_s18, %s1317_s10  ;;  %p1325_p4 = scmp.lt.s32.totalorder %s236_s18, %s236_s18 }
  0x5e   : > { %p1326_p0 = scmp.lt.s32.totalorder %s1317_s10, %s1317_s10 }
  0x5f   : > { %p1320_p6 = pnand %p1318_p13, %p1842_p2 }
  0x60   : > { %p1327_p12 = por %p1326_p0, %p1325_p4 }
  0x61   : > { %p1321_p1 = pneg %p1320_p6 }
  0x63   : > { %p1328_p3 = pnand %p1327_p12, %p1321_p1 }
  0x65   : > { %1331 = shalt.err (!%p1328_p3)
}
  0x66   : > { %s1459_s0 = smov 64   ;;  %s1460_s23 = smov 4  }
  0x67   : > { %1130 = dma.hbm_to_vmem [thread:$0]  (!%p1549_p7), %s1816_s4, 1024, %s236_s18, [#allocation7], %s1459_s0, %s1459_s0, %s1460_s23  }
  0x68   : > { %s1332_s21 = scalar_lea.hbm %s1649_s15, 4096  ;;  %p1843_p12 = scmp.ne.s32.totalorder %s1840_s20, 0 }
  0x69   : > { %p1333_p0 = scmp.ne.s32.totalorder %s1649_s15, %s1332_s21  ;;  %s1337_s12 = scalar_lea.hbm %s1814_s2, 8192 }
  0x6a   : > { %p1844_p10 = pneg %p1843_p12  ;;  %p1338_p9 = scmp.lt.u32.totalorder %s1649_s15, %s1814_s2 }
  0x6b   : > { %p1339_p11 = scmp.lt.u32.totalorder %s1337_s12, %s1332_s21  ;;  %p1341_p2 = scmp.lt.u32.totalorder %s1332_s21, %s1649_s15 }
  0x6c   : > { %p1335_p5 = pnand %p1333_p0, %p1844_p10 }
  0x6d   : > { %p1340_p13 = por %p1339_p11, %p1338_p9 }
  0x6e   : > { %p1336_p8 = pneg %p1335_p5 }
  0x6f   : > { %p1342_p6 = por %p1341_p2, %p1340_p13 }
  0x71   : > { %p1343_p1 = pnand %p1342_p6, %p1336_p8 }
  0x73   : > { %1346 = shalt.err (!%p1343_p1)
}
  0x74   : > { %s1347_s8 = scalar_lea.vmem %s1642_s17, 4096  ;;  %p1845_p4 = pmov %p1844_p10 }
  0x75   : > { %p1348_p7 = scmp.ne.s32.totalorder %s1642_s17, %s1347_s8  ;;  %s1461_s18 = smov [#allocation8]  }
  0x76   : > { %s1352_s11 = sshll.u32 %s1461_s18, 4  ;;  %s1353_s11 = int_to_ptr.vmem [resolvable:$false] %s1352_s11 }
  0x77   : > { %p1350_p3 = pnand %p1348_p7, %p1845_p4  ;;  %s1354_s19 = scalar_lea.vmem %s1353_s11, 8192 }
  0x78   : > { %p1355_p10 = scmp.lt.s32.totalorder %s1642_s17, %s1353_s11  ;;  %p1356_p5 = scmp.lt.s32.totalorder %s1354_s19, %s1347_s8 }
  0x79   : > { %p1351_p0 = pneg %p1350_p3 }
  0x7a   : > { %p1357_p9 = por %p1356_p5, %p1355_p10 }
  0x7c   : > { %p1358_p11 = pnand %p1357_p9, %p1351_p0 }
  0x7e   : > { %1361 = shalt.err (!%p1358_p11)
}
  0x7f   : > { %1137 = dma.hbm_to_vmem [thread:$0]  (!%p1843_p12), %s1649_s15, 4096, %s1642_s17, %s1613_s30, %s1459_s0, %s1459_s0, %s1460_s23  }
  0x80   : > { %p1846_p8 = scmp.ne.s32.totalorder %s1832_s29, 0 }
  0x81   : > { %s298_s10 = sand.u32 (!%p1846_p8), 1, %s1529_s27   ;;  %s300_s9 = sand.u32 (!%p1846_p8), 1, %s1438_s22  }
  0x82   : > { %296 = sbr.rel (%p1846_p8) target bundleno = 703 (0x2bf), region = 44  ;;  %s1705_s14 = sshll.u32 (!%p1846_p8), %s300_s9, 4 }
  0x83   : > { %s299_s21 = scalar_lea.sflag (!%p1846_p8), [#allocation4], %s298_s10  ;;  %s302_s20 = scalar_lea.vmem (!%p1846_p8), [#allocation3], %s1705_s14 }
  0x84   : > { %p1847_p13 = scmp.ne.s32.totalorder (!%p1846_p8), %s1831_s28, 0 }
  0x89   : > { %1413 = dma.done.wait (%p1847_p13), %s299_s21, 256  }
  0x8a   : > { %1415 = vsyncadd (%p1847_p13), %s299_s21, 4294967040  ;;  %p1848_p12 = scmp.eq.s32.totalorder %s1529_s27, 0 }
  0x8c   : > { %1417 = dma.done.wait (%p1848_p12), [#allocation7], 64   ;;  %p1849_p2 = pmov %p1848_p12 }
  0x8d   : > { %s978_s29 = sshll.u32 %s300_s9, 8 }
  0x8e   : > { %1419 = vsyncadd (%p1849_p2), [#allocation7], 4294967232  ;;  %s1716_s30 = scalar_lea.vmem [#allocation8], %s978_s29 }
  0x8f   : > { %1421 = dma.done.wait (%p1847_p13), %s299_s21, 4096  }
  0x90   : > { %1423 = vsyncadd (%p1847_p13), %s299_s21, 4294963200  ;;  %p1850_p6 = pmov %p1849_p2 }
  0x91   : > { %p1851_p1 = pmov %p1849_p2 }
  0x92   : > { %1425 = dma.done.wait (%p1850_p6), [#allocation7], 1024  }
  0x93   : > { %1427 = vsyncadd (%p1851_p1), [#allocation7], 4294966272  ;;  %v1200_v0 = vld [vmem:[%s1716_s30 + $0x40] sm:$0xff]   ;;  %v1204_v4 = vld [vmem:[%s1716_s30 + $0x48] sm:$0xff]   ;;  %p1016_p7 = scmp.ne.s32.totalorder %s1446_s24, 0 }
  0x94   : > { %v1201_v1 = vld [vmem:[%s1716_s30 + $0xc0] sm:$0xff]   ;;  %1035 = vmatprep.subr.bf16.mxu0 %v1200_v0  ;;  %v1205_v5 = vld [vmem:[%s1716_s30 + $0xc8] sm:$0xff]   ;;  %v1208_v8 = vld [vmem:[%s1716_s30 + $0x50] sm:$0xff]  }
  0x95   : > { %v1202_v2 = vld [vmem:[%s1716_s30] sm:$0xff]   ;;  %1057 = vmatprep.subr.bf16.mxu1 %v1201_v1  ;;  %v1206_v6 = vld [vmem:[%s1716_s30 + $0x8] sm:$0xff]   ;;  %v1209_v9 = vld [vmem:[%s1716_s30 + $0xd0] sm:$0xff]  }
  0x96   : > { %v1203_v3 = vld [vmem:[%s1716_s30 + $0x80] sm:$0xff]   ;;  %1036 = vmatpush3.bf16.msra.mxu0 %v1202_v2  ;;  %v1207_v7 = vld [vmem:[%s1716_s30 + $0x88] sm:$0xff]   ;;  %v1210_v10 = vld [vmem:[%s1716_s30 + $0x10] sm:$0xff]  }
  0x97   : > { %1058 = vmatpush3.bf16.msra.mxu1 %v1203_v3  ;;  %1037 = vmatprep.subr.bf16.mxu0 %v1204_v4  ;;  %v1211_v11 = vld [vmem:[%s1716_s30 + $0x90] sm:$0xff]   ;;  %v1212_v12 = vld [vmem:[%s1716_s30 + $0x58] sm:$0xff]   ;;  %v1216_v16 = vld [vmem:[%s1716_s30 + $0x60] sm:$0xff]  }
  0x98   : > { %1059 = vmatprep.subr.bf16.mxu1 %v1205_v5  ;;  %v1213_v13 = vld [vmem:[%s1716_s30 + $0xd8] sm:$0xff]   ;;  %v1217_v17 = vld [vmem:[%s1716_s30 + $0xe0] sm:$0xff]   ;;  %v1220_v20 = vld [vmem:[%s1716_s30 + $0x68] sm:$0xff]  }
  0x99   : > { %v1214_v14 = vld [vmem:[%s1716_s30 + $0x18] sm:$0xff]   ;;  %v1218_v18 = vld [vmem:[%s1716_s30 + $0x20] sm:$0xff]   ;;  %v1221_v21 = vld [vmem:[%s1716_s30 + $0xe8] sm:$0xff]  }
  0x9a   : > { %1038 = vmatpush3.bf16.msra.mxu0 %v1206_v6  ;;  %v1215_v15 = vld [vmem:[%s1716_s30 + $0x98] sm:$0xff]   ;;  %v1219_v19 = vld [vmem:[%s1716_s30 + $0xa0] sm:$0xff]   ;;  %v1222_v22 = vld [vmem:[%s1716_s30 + $0x28] sm:$0xff]  }
  0x9b   : > { %1060 = vmatpush3.bf16.msra.mxu1 %v1207_v7  ;;  %1039 = vmatprep.subr.bf16.mxu0 %v1208_v8  ;;  %v1223_v23 = vld [vmem:[%s1716_s30 + $0xa8] sm:$0xff]   ;;  %v1224_v24 = vld [vmem:[%s1716_s30 + $0x70] sm:$0xff]   ;;  %v1228_v28 = vld [vmem:[%s1716_s30 + $0x78] sm:$0xff]  }
  0x9c   : > { %1061 = vmatprep.subr.bf16.mxu1 %v1209_v9  ;;  %v1225_v25 = vld [vmem:[%s1716_s30 + $0xf0] sm:$0xff]   ;;  %v1229_v29 = vld [vmem:[%s1716_s30 + $0xf8] sm:$0xff]  }
  0x9d   : > { %v1226_v26 = vld [vmem:[%s1716_s30 + $0x30] sm:$0xff]   ;;  %v1230_v30 = vld [vmem:[%s1716_s30 + $0x38] sm:$0xff]  }
  0x9e   : > { %1040 = vmatpush3.bf16.msra.mxu0 %v1210_v10  ;;  %v1227_v27 = vld [vmem:[%s1716_s30 + $0xb0] sm:$0xff]   ;;  %v1231_v31 = vld [vmem:[%s1716_s30 + $0xb8] sm:$0xff]  }
  0x9f   : > { %1062 = vmatpush3.bf16.msra.mxu1 %v1211_v11  ;;  %1041 = vmatprep.subr.bf16.mxu0 %v1212_v12  ;;  %v351_v32 = vld [vmem:[%s302_s20] sm:$0xff]  ;;  %v352_v33 = vld [vmem:[%s302_s20 + $0x8] sm:$0xff] }
  0xa0   : > { %1063 = vmatprep.subr.bf16.mxu1 %v1213_v13  ;;  %v980_v34 = vcombine.low %v351_v32, %v351_v32  ;;  %v981_v35 = vcombine.high %v351_v32, %v351_v32  ;;  %v982_v36 = vcombine.low %v352_v33, %v352_v33  ;;  %v983_v37 = vcombine.high %v352_v33, %v352_v33 }
  0xa2   : > { %1042 = vmatpush3.bf16.msra.mxu0 %v1214_v14  ;;  %655 = vmatprep.mubr.bf16.mxu0 %v981_v35 }
  0xa3   : > { %1064 = vmatpush3.bf16.msra.mxu1 %v1215_v15  ;;  %1043 = vmatprep.subr.bf16.mxu0 %v1216_v16 }
  0xa4   : > { %1065 = vmatprep.subr.bf16.mxu1 %v1217_v17  ;;  %695 = vmatprep.mubr.bf16.mxu1 %v983_v37 }
  0xa6   : > { %1044 = vmatpush3.bf16.msra.mxu0 %v1218_v18 }
  0xa7   : > { %1066 = vmatpush3.bf16.msra.mxu1 %v1219_v19  ;;  %1045 = vmatprep.subr.bf16.mxu0 %v1220_v20 }
  0xa8   : > { %1067 = vmatprep.subr.bf16.mxu1 %v1221_v21 }
  0xaa   : > { %1046 = vmatpush3.bf16.msra.mxu0 %v1222_v22 }
  0xab   : > { %1068 = vmatpush3.bf16.msra.mxu1 %v1223_v23  ;;  %1047 = vmatprep.subr.bf16.mxu0 %v1224_v24 }
  0xac   : > { %1069 = vmatprep.subr.bf16.mxu1 %v1225_v25 }
  0xae   : > { %1048 = vmatpush3.bf16.msra.mxu0 %v1226_v26 }
  0xaf   : > { %1070 = vmatpush3.bf16.msra.mxu1 %v1227_v27  ;;  %1049 = vmatprep.subr.bf16.mxu0 %v1228_v28 }
  0xb0   : > { %1071 = vmatprep.subr.bf16.mxu1 %v1229_v29 }
  0xb2   : > { %1050 = vmatpush3.bf16.msra.mxu0 %v1230_v30 }
  0xb3   : > { %1072 = vmatpush3.bf16.msra.mxu1 %v1231_v31 }
  0xb5   : > { %656 = vmatmul.mubr.bf16.vlgmr.msra.gmra.mrb[0].mxu0 %v980_v34 }
  0xb6   : > { %696 = vmatmul.mubr.bf16.vlgmr.msra.gmra.mrb[0].mxu1 %v982_v36 }
 0x187   : > { %706 = sbr.rel (%p1016_p7) target bundleno = 400 (0x190), region = 64 }
 0x188   : > { %v1051_v38 = vpop.f32.mrb[0].mxu0 }
 0x189   : > { %v1073_v39 = vpop.f32.mrb[0].mxu1  ;;  %v1052_v40 = vpop.f32.mrb[1].mxu0 }
 0x18a   : > { %v1074_v41 = vpop.f32.mrb[1].mxu1  ;;  %v1053_v42 = vadd.f32 %v1052_v40, %v1051_v38  ;;  %v1054_v44 = vpop.f32.mrb[2].mxu0 }
 0x18b   : > { %v1075_v43 = vadd.f32 %v1074_v41, %v1073_v39  ;;  %v1076_v45 = vpop.f32.mrb[2].mxu1  ;;  %v1055_v46 = vpop.f32.mrb[3].mxu0 }
 0x18c   : > { %v1077_v47 = vpop.f32.mrb[3].mxu1 }
 0x18d   : > { %v698_v48 = vadd.f32 %v1075_v43, %v1053_v42 }
 0x18f   : > { %707 = vst [vmem:[#allocation2] sm:$0xff] %v698_v48 }
 0x190 PF: > { %p1017_p4 = scmp.eq.s32.totalorder %s1446_s24, 0 }
 0x192   : > { %711 = sbr.rel (%p1017_p4) target bundleno = 410 (0x19a), region = 68 }
 0x196   : > { %v712_v49 = vld [vmem:[#allocation2] sm:$0xff] (!%p1017_p4) }
 0x197   : > { %v713_v50 = vadd.f32 (!%p1017_p4), %v712_v49, %v698_v48 }
 0x199   : > { %714 = vst [vmem:[#allocation2] sm:$0xff] %v713_v50 }
 0x19a PF: > { %p1018_p3 = scmp.ne.s32.totalorder %s1446_s24, 1 }
 0x19b   : > { %v1236_v51 = vld [vmem:[#allocation9] sm:$0xff] (!%p1018_p3)   ;;  %v1462_v52 = vmov (!%p1018_p3), 0.0   ;;  %v1237_v53 = vld [vmem:[#allocation9 + $0x8] sm:$0xff] (!%p1018_p3)   ;;  %vm1463_vm0 = vmmov (!%p1018_p3), 0   ;;  %v1238_v54 = vld [vmem:[#allocation9 + $0x10] sm:$0xff] (!%p1018_p3)  }
 0x19c   : > { %718 = sbr.rel (%p1018_p3) target bundleno = 678 (0x2a6), region = 72  ;;  %1088 = vmatprep.subr.bf16.mxu0 (!%p1018_p3), %v1462_v52  ;;  %1104 = vmatprep.mubr.msk.bf16.mxu0 (!%p1018_p3), %vm1463_vm0, %v1462_v52  ;;  %v1239_v55 = vld [vmem:[#allocation9 + $0x18] sm:$0xff] (!%p1018_p3)   ;;  %v1240_v56 = vld [vmem:[#allocation9 + $0x20] sm:$0xff] (!%p1018_p3)   ;;  %v1019_v58 = vld [vmem:[%s1815_s3] ss:$0 sm:$0xff] (!%p1018_p3) }
 0x19d   : > { %1089 = vmatpush3.bf16.msra.mxu0 (!%p1018_p3), %v1236_v51  ;;  %v1241_v60 = vld [vmem:[#allocation9 + $0x28] sm:$0xff] (!%p1018_p3)   ;;  %v729_v61 = vld [vmem:[#allocation6] sm:$0xf] (!%p1018_p3)  ;;  %v1242_v0 = vld [vmem:[#allocation9 + $0x30] sm:$0xff] (!%p1018_p3)  }
 0x19e   : > { %1090 = vmatprep.subr.bf16.mxu0 (!%p1018_p3), %v1462_v52  ;;  %v730_v63 = vunpack.c.l.bf16 (!%p1018_p3), %v729_v61  ;;  %v1243_v2 = vld [vmem:[#allocation9 + $0x38] sm:$0xff] (!%p1018_p3)   ;;  %v1020_v4 = vld [vmem:[%s1817_s5] ss:$0 sm:$0xff] (!%p1018_p3) }
 0x1a0   : > { %v719_v57 = vld [vmem:[#allocation2] sm:$0xff] (!%p1018_p3) }
 0x1a1   : > { %1091 = vmatpush3.bf16.msra.mxu0 (!%p1018_p3), %v1237_v53  ;;  %v727_v59 = vadd.f32 (!%p1018_p3), %v1019_v58, %v719_v57 }
 0x1a2   : > { %1092 = vmatprep.subr.bf16.mxu0 (!%p1018_p3), %v1462_v52 }
 0x1a3   : > { %v728_v62 = vmax.f32 %v727_v59, 0.0 }
 0x1a5   : > { %1093 = vmatpush3.bf16.msra.mxu0 %v1238_v54  ;;  %v731_v1 = vadd.f32 %v730_v63, %v728_v62 }
 0x1a6   : > { %1094 = vmatprep.subr.bf16.mxu0 %v1462_v52 }
 0x1a7   : > { %v732_v3 = vpack.c.bf16 %v731_v1, %v731_v1 }
 0x1a9   : > { %1095 = vmatpush3.bf16.msra.mxu0 %v1239_v55 }
 0x1aa   : > { %1096 = vmatprep.subr.bf16.mxu0 %v1462_v52 }
 0x1ad   : > { %1097 = vmatpush3.bf16.msra.mxu0 %v1240_v56 }
 0x1ae   : > { %1098 = vmatprep.subr.bf16.mxu0 %v1462_v52 }
 0x1b1   : > { %1099 = vmatpush3.bf16.msra.mxu0 %v1241_v60 }
 0x1b2   : > { %1100 = vmatprep.subr.bf16.mxu0 %v1462_v52 }
 0x1b5   : > { %1101 = vmatpush3.bf16.msra.mxu0 %v1242_v0 }
 0x1b6   : > { %1102 = vmatprep.subr.bf16.mxu0 %v1462_v52 }
 0x1b9   : > { %1103 = vmatpush3.bf16.msra.mxu0 %v1243_v2 }
 0x1bc   : > { %1105 = vmatmul.mubr.bf16.vlgmr.msra.gmra.mrb[0].mxu0 %v732_v3 }
 0x28f   : > { %v838_v5 = vpop.f32.mrb[0].mxu0 }
 0x290   : > { %v839_v6 = vadd.f32 %v1020_v4, %v838_v5  ;;  %v1106_v7 = vpop.f32.mrb[1].mxu0 }
 0x291   : > { %v841_v8 = vpop.f32.mrb[2].mxu0 }
 0x292   : > { %v844_v9 = vmul.f32 0.5, %v839_v6  ;;  %v1107_v10 = vpop.f32.mrb[3].mxu0 }
 0x294   : > { %1244 = vtanh.f32 %v844_v9 }
 0x29e   : > { %v1245_v11 = vpop.eup %1244 }
 0x29f   : > { %v846_v12 = vadd.f32 1.0, %v1245_v11 }
 0x2a1   : > { %v847_v13 = vmul.f32 0.5, %v846_v12 }
 0x2a3   : > { %v848_v14 = vpack.c.bf16 %v847_v13, %v847_v13 }
 0x2a5   : > { %849 = vst [vmem:[#allocation10] sm:$0xf] %v848_v14 }
 0x2a6 PF: > { %p1143_p0 = scmp.eq.s32.totalorder %s1529_s27, 1  ;;  %s1464_s0 = smov [#allocation10]  }
 0x2a7   : > { %s859_s23 = sshll.u32 %s1464_s0, 4  ;;  %s860_s23 = int_to_ptr.vmem [resolvable:$true] %s859_s23 }
 0x2a8   : > { %s1362_s16 = scalar_lea.vmem %s860_s23, 64  ;;  %p1369_p11 = scmp.lt.s32.totalorder %s860_s23, %s860_s23 }
 0x2a9   : > { %p1363_p10 = scmp.ne.s32.totalorder %s860_s23, %s1362_s16  ;;  %p1370_p8 = scmp.lt.s32.totalorder %s1362_s16, %s1362_s16 }
 0x2ab   : > { %p1364_p5 = pnand %p1363_p10, %p1143_p0  ;;  %p1371_p13 = por %p1370_p8, %p1369_p11 }
 0x2ad   : > { %p1365_p9 = pneg %p1364_p5 }
 0x2af   : > { %p1372_p12 = pnand %p1371_p13, %p1365_p9 }
 0x2b1   : > { %1375 = shalt.err (!%p1372_p12)
}
 0x2b2   : > { %s1376_s13 = scalar_lea.hbm %s1818_s6, 64 }
 0x2b3   : > { %p1377_p2 = scmp.ne.s32.totalorder %s1818_s6, %s1376_s13  ;;  %p1382_p7 = scmp.lt.u32.totalorder %s1376_s13, %s1818_s6 }
 0x2b5   : > { %p1378_p6 = pnand %p1377_p2, %p1143_p0 }
 0x2b7   : > { %p1379_p1 = pneg %p1378_p6 }
 0x2b9   : > { %p1384_p4 = pnand %p1382_p7, %p1379_p1 }
 0x2bb   : > { %1387 = shalt.err (!%p1384_p4)
}
 0x2bc   : > { %1121 = dma.vmem_to_hbm [thread:$0]  (%p1143_p0), %s860_s23, 64, %s1818_s6, [#allocation5]  }
 0x2bd   : > { %1429 = dma.done.wait (%p1143_p0), [#allocation5], 64  }
 0x2be   : > { %1431 = vsyncadd (%p1143_p0), [#allocation5], 4294967232 }
 0x2bf PF: > { %s21_s26 = sadd.s32 1, %s1454_s26   ;;  %s1852_s9 = sld [smem:[#allocation16_spill]] }
 0x2c0   : > { %p18_p3 = scmp.ge.s32.totalorder %s21_s26, 4   ;;  %s1853_s23 = sld [smem:[#allocation18_spill]] }
 0x2c1   : > { %s1854_s14 = sld [smem:[#allocation17_spill]]  ;;  %s1855_s21 = smov %s1438_s22 }
 0x2c2   : > { %s1857_s24 = smov %s1450_s25  ;;  %20 = sbr.rel (!%p18_p3) target bundleno = 9 (0x9), region = 114 }
 0x2c5   : > { %s1856_s22 = smov %s1852_s9 }
 0x2c7   : > { %s1858_s25 = smov %s1854_s14 }
 0x2c9   :  { %872 = vsyncpa [#allocation4], 1 }
 0x2ca   :  { %874 = vsyncpa [#allocation4 + $0x1], 1 }
 0x2cb   :  { %875 = vsyncpa [#allocation7], 1 }
 0x2cc   :  { %876 = vsyncpa [#allocation5], 1 }
 0x2cd   :  { %878 = vsyncpa [#allocation5 + $0x1], 1 }

</bundles_post_ra>
